<compile_context>
chip_gen: v5e
topology: v5e:2x2
jax: 0.10.0
libtpu: 0.0.40
codegen_flags: <defaults>
</compile_context>

<pallas_src>
import functools
import math

import jax
import jax.numpy as jnp
from jax import lax
from jax.experimental import pallas as pl
from jax.experimental.pallas import tpu as pltpu


# ---------------------------------------------------------------------------
# Generation-aware knobs (fused threshold, tile budgets, VMEM limits, cores).
# ---------------------------------------------------------------------------
def _chip_profile():
    kind = ""
    try:
        dev = jax.devices()[0]
        if dev.platform == "tpu":
            kind = dev.device_kind.lower()
    except Exception:
        pass
    compact = kind.replace(" ", "")
    if "v7" in compact or "tpu7" in compact:
        # 2 TensorCores per chip, 64 MiB VMEM per core.  The ungridded fused
        # kernel runs on one core only, so keep its threshold small and rely
        # on the dual-core two-pass path for anything sizable.
        return dict(cores=2, fused_max=4 << 20, fused_vmem=48 << 20,
                    pass_vmem=48 << 20, stats_tile=6 << 20, norm_tile=4 << 20)
    if "v5" in compact or "v6" in compact:
        # 1 TensorCore, 128 MiB physical VMEM (scoped default is only
        # 16/32 MiB, so raise vmem_limit_bytes explicitly).
        return dict(cores=1, fused_max=16 << 20, fused_vmem=96 << 20,
                    pass_vmem=64 << 20, stats_tile=6 << 20, norm_tile=4 << 20)
    # Unknown / older TPU: conservative settings.
    return dict(cores=1, fused_max=2 << 20, fused_vmem=None,
                pass_vmem=None, stats_tile=1 << 20, norm_tile=1 << 20)


def _compiler_params(dimension_semantics=None, vmem_limit=None):
    kw = {}
    if dimension_semantics is not None:
        kw["dimension_semantics"] = dimension_semantics
    if vmem_limit:
        kw["vmem_limit_bytes"] = int(vmem_limit)
    return pltpu.CompilerParams(**kw) if kw else None


def _pick_tile_rows(rows, cp, target_bytes):
    """Largest row tile under an f32-equivalent byte budget; multiple of 8
    sublanes, or the full extent for small inputs."""
    per_row = cp * 4
    t = max(8, int(target_bytes) // per_row)
    t = (t // 8) * 8
    return rows if t >= rows else t


def _fold(v, fold_shifts):
    """Fold per-lane sums of a packed (1, 128) row into per-channel sums
    (broadcast across the P copies) using circular lane rotations (XLU)."""
    for sh in fold_shifts:
        v = v + pltpu.roll(v, sh, 1)
    return v


# ---------------------------------------------------------------------------
# Fused single-pass kernel: stats + normalize with the packed x in VMEM.
# Only used when the roll-fold stays within one vreg row (cp == 128) or is
# not needed (P == 1).
# ---------------------------------------------------------------------------
def _fused_kernel(x_ref, gamma_ref, beta_ref, o_ref, *,
                  inv_n, eps, fold_shifts, pad_rows):
    x = x_ref[...].astype(jnp.float32)
    s = _fold(jnp.sum(x, axis=0, keepdims=True), fold_shifts)
    mean = s * jnp.float32(inv_n)
    # Centered variance: x is resident in VMEM so the second pass is free
    # HBM-wise and avoids the E[x^2] - mean^2 cancellation issue.
    d = x - mean
    dsq = _fold(jnp.sum(d * d, axis=0, keepdims=True), fold_shifts)
    if pad_rows:
        # Each zero pad row contributes exactly mean^2 per channel to the
        # centered sum of squares; subtract that exactly.
        dsq = dsq - jnp.float32(pad_rows) * mean * mean
    var = jnp.maximum(dsq * jnp.float32(inv_n), 0.0)
    inv_std = lax.rsqrt(var + jnp.float32(eps))
    scale = gamma_ref[...] * inv_std
    shift = beta_ref[...] - mean * scale
    o_ref[...] = (x * scale + shift).astype(o_ref.dtype)


def _fused_call(x, gamma_t, beta_t, *, inv_n, eps, fold_shifts, pad_rows,
                vmem_limit):
    rows, cp = x.shape
    kernel = functools.partial(_fused_kernel, inv_n=inv_n, eps=eps,
                               fold_shifts=fold_shifts, pad_rows=pad_rows)
    return pl.pallas_call(
        kernel,
        out_shape=jax.ShapeDtypeStruct((rows, cp), x.dtype),
        in_specs=[pl.BlockSpec(memory_space=pltpu.MemorySpace.VMEM)] * 3,
        out_specs=pl.BlockSpec(memory_space=pltpu.MemorySpace.VMEM),
        compiler_params=_compiler_params(vmem_limit=vmem_limit),
    )(x, gamma_t, beta_t)


# ---------------------------------------------------------------------------
# Two-pass path, kernel 1: per-lane sum / sumsq reduced over the row axis.
# Grid = (num_splits, tiles_per_split); the leading axis is "parallel" so the
# two v7x TensorCores each reduce half of the row tiles into their own
# (2, cp) partial, accumulated directly in the resident output block.
# Tiles are interleaved (global tile = i * num_splits + s) and the index map
# clamps virtual trailing tiles back in bounds; the in-kernel mask (gated to
# the last step of each split) zeroes their contribution.
# ---------------------------------------------------------------------------
def _stats_kernel(x_ref, stats_ref, *, tile_rows, rows, num_splits,
                  tiles_per_split, needs_mask):
    s = pl.program_id(0)
    i = pl.program_id(1)

    @pl.when(i == 0)
    def _():
        stats_ref[...] = jnp.zeros_like(stats_ref)

    def accumulate(x):
        x = x.astype(jnp.float32)
        stats_ref[0:1, :] += jnp.sum(x, axis=0, keepdims=True)
        stats_ref[1:2, :] += jnp.sum(x * x, axis=0, keepdims=True)

    if needs_mask:
        # Only the last step of each split can touch the ragged tail (or a
        # fully-virtual clamped tile); every other step stays unmasked.
        @pl.when(i < tiles_per_split - 1)
        def _():
            accumulate(x_ref[...])

        @pl.when(i == tiles_per_split - 1)
        def _():
            t = i * num_splits + s                       # un-clamped tile id
            valid = jnp.int32(rows) - t * jnp.int32(tile_rows)
            ridx = lax.broadcasted_iota(jnp.int32, (tile_rows, 1), 0)
            x = jnp.where(ridx < valid, x_ref[...].astype(jnp.float32), 0.0)
            accumulate(x)
    else:
        accumulate(x_ref[...])


def _compute_stats(x, *, tile_rows, num_splits, vmem_limit):
    rows, cp = x.shape
    total_tiles = pl.cdiv(rows, tile_rows)
    num_splits = max(1, min(num_splits, total_tiles))
    tiles_per_split = pl.cdiv(total_tiles, num_splits)
    padded_tiles = tiles_per_split * num_splits
    needs_mask = padded_tiles * tile_rows != rows
    clamp = padded_tiles != total_tiles

    def x_map(s, i):
        t = i * num_splits + s
        if clamp:
            t = jnp.minimum(t, total_tiles - 1)
        return (t, 0)

    kernel = functools.partial(
        _stats_kernel, tile_rows=tile_rows, rows=rows, num_splits=num_splits,
        tiles_per_split=tiles_per_split, needs_mask=needs_mask)

    return pl.pallas_call(
        kernel,
        out_shape=jax.ShapeDtypeStruct((num_splits, 2, cp), jnp.float32),
        grid=(num_splits, tiles_per_split),
        in_specs=[pl.BlockSpec((tile_rows, cp), x_map)],
        out_specs=pl.BlockSpec((None, 2, cp), lambda s, i: (s, 0, 0)),
        compiler_params=_compiler_params(("parallel", "arbitrary"), vmem_limit),
    )(x)


# ---------------------------------------------------------------------------
# Two-pass path, kernel 2: stream y = x * scale + shift with large tiles.
# scale/shift are precomputed per-lane (1, cp), so the kernel is a pure
# bandwidth-bound elementwise stream on a megacore-friendly "parallel" grid.
# ---------------------------------------------------------------------------
def _norm_kernel(scale_ref, shift_ref, x_ref, o_ref):
    x = x_ref[...].astype(jnp.float32)
    o_ref[...] = (x * scale_ref[...] + shift_ref[...]).astype(o_ref.dtype)


def _apply_norm(scale_t, shift_t, x, *, tile_rows, vmem_limit):
    rows, cp = x.shape
    return pl.pallas_call(
        _norm_kernel,
        out_shape=jax.ShapeDtypeStruct((rows, cp), x.dtype),
        grid=(pl.cdiv(rows, tile_rows),),
        in_specs=[
            pl.BlockSpec((1, cp), lambda i: (0, 0)),     # scale (resident)
            pl.BlockSpec((1, cp), lambda i: (0, 0)),     # shift (resident)
            pl.BlockSpec((tile_rows, cp), lambda i: (i, 0)),
        ],
        out_specs=pl.BlockSpec((tile_rows, cp), lambda i: (i, 0)),
        compiler_params=_compiler_params(("parallel",), vmem_limit),
    )(scale_t, shift_t, x)


# ---------------------------------------------------------------------------
# Wrapper: MinkowskiSyncBatchNorm.forward on the feature matrix F: [N, C]
# ---------------------------------------------------------------------------
@functools.partial(jax.jit, static_argnames=("eps", "force_two_pass"))
def minkowski_sync_batchnorm_forward(feats, gamma, beta, eps=1e-5,
                                     force_two_pass=False):
    n, c = feats.shape
    prof = _chip_profile()

    # Lane-dense packing: [N, C] -> [N/P, C*P] with C*P = lcm(C, 128).
    p = 128 // math.gcd(c, 128)
    cp = c * p
    pad = (-n) % p
    x2 = feats
    if pad:
        x2 = jnp.concatenate(
            [feats, jnp.zeros((pad, c), dtype=feats.dtype)], axis=0)
    rows = (n + pad) // p
    x = x2.reshape(rows, cp)

    gamma32 = gamma.astype(jnp.float32).reshape(1, c)
    beta32 = beta.astype(jnp.float32).reshape(1, c)
    inv_n = 1.0 / float(n)

    x_f32_bytes = rows * cp * 4
    fused_ok = (p == 1 or cp == 128) and not force_two_pass

    if fused_ok and x_f32_bytes <= prof["fused_max"]:
        # Fused single pass: circular rolls by c, 2c, ... fold the P packed
        # copies of each channel into a lane-broadcast per-channel sum.
        fold_shifts = tuple(c * (1 << k) for k in range(p.bit_length() - 1))
        gamma_t = jnp.tile(gamma32, (1, p))
        beta_t = jnp.tile(beta32, (1, p))
        out = _fused_call(x, gamma_t, beta_t, inv_n=inv_n, eps=eps,
                          fold_shifts=fold_shifts, pad_rows=pad,
                          vmem_limit=prof["fused_vmem"])
    else:
        stats_tile = _pick_tile_rows(rows, cp, prof["stats_tile"])
        norm_tile = _pick_tile_rows(rows, cp, prof["norm_tile"])
        total_tiles = pl.cdiv(rows, stats_tile)
        num_splits = 2 if (prof["cores"] >= 2 and total_tiles >= 2) else 1

        stats = _compute_stats(x, tile_rows=stats_tile, num_splits=num_splits,
                               vmem_limit=prof["pass_vmem"])

        # Tiny epilogue (fused under jit): combine per-core partials, fold the
        # P packed copies, compute per-channel scale/shift and tile to cp.
        tot = jnp.sum(stats, axis=0)                     # (2, cp)
        ch = tot.reshape(2, p, c).sum(axis=1)            # (2, c)
        mean = ch[0] * jnp.float32(inv_n)
        var = jnp.maximum(ch[1] * jnp.float32(inv_n) - mean * mean, 0.0)
        inv_std = lax.rsqrt(var + jnp.float32(eps))
        scale = gamma32[0] * inv_std
        shift = beta32[0] - mean * scale
        scale_t = jnp.tile(scale.reshape(1, c), (1, p))
        shift_t = jnp.tile(shift.reshape(1, c), (1, p))

        out = _apply_norm(scale_t, shift_t, x, tile_rows=norm_tile,
                          vmem_limit=prof["pass_vmem"])

    out = out.reshape(rows * p, c)
    if pad:
        out = out[:n]
    return out


def _reference(feats, gamma, beta, eps):
    mean = feats.mean(axis=0)
    var = feats.var(axis=0)  # biased
    return (feats - mean) / jnp.sqrt(var + eps) * gamma + beta


if __name__ == "__main__":
    key = jax.random.PRNGKey(0)
    eps = 1e-5

    # (N, C, force_two_pass) cases:
    #   fused packed (cp=128) / fused with N-padding / fused with P=1 /
    #   two-pass multi-tile (megacore split + mask on v7x, pad, ragged) /
    #   C not dividing 128 (packed cp=384) / general C (P=64, cp=1920, pad).
    cases = [
        (256, 32, False),
        (257, 32, False),
        (4096, 128, False),
        (100003, 32, True),
        (200, 96, False),
        (1001, 30, False),
    ]

    for idx, (n, c, force) in enumerate(cases):
        k1, k2, k3, key = jax.random.split(key, 4)
        feats = jax.random.normal(k1, (n, c), dtype=jnp.float32) * 2.0 + 0.5
        gamma = 1.0 + 0.1 * jax.random.normal(k2, (c,), dtype=jnp.float32)
        beta = 0.1 * jax.random.normal(k3, (c,), dtype=jnp.float32)

        out = minkowski_sync_batchnorm_forward(
            feats, gamma, beta, eps=eps, force_two_pass=force)
        out = jax.block_until_ready(out)

        ref = _reference(feats, gamma, beta, eps)
        assert out.shape == feats.shape and out.dtype == feats.dtype
        assert jnp.allclose(out, ref, atol=3e-3, rtol=3e-3), (
            f"mismatch vs reference in case {idx} (N={n}, C={c})")

    print("KERNEL_OK")
</pallas_src>

<mosaic_0001>
module attributes {stable_mosaic.version = 11 : i64} {
  func.func @_fused_kernel(%arg0: memref<64x128xf32, #tpu.memory_space<vmem>>, %arg1: memref<1x128xf32, #tpu.memory_space<vmem>>, %arg2: memref<1x128xf32, #tpu.memory_space<vmem>>, %arg3: memref<64x128xf32, #tpu.memory_space<vmem>>) attributes {dimension_semantics = [], scalar_prefetch = 0 : i64, scratch_operands = 0 : i64, tpu.core_type = #tpu.core_type<tc>} {
    %c0 = arith.constant 0 : index
    %c0_0 = arith.constant 0 : index
    %0 = vector.load %arg0[%c0, %c0_0] : memref<64x128xf32, #tpu.memory_space<vmem>>, vector<64x128xf32>
    %cst = arith.constant dense<0.000000e+00> : vector<128xf32>
    %1 = vector.multi_reduction <add>, %0, %cst [0] : vector<64x128xf32> to vector<128xf32>
    %2 = vector.shape_cast %1 : vector<128xf32> to vector<1x128xf32>
    %c32_i32 = arith.constant 32 : i32
    %3 = tpu.dynamic_rotate %2 by %c32_i32 dim 1 : vector<1x128xf32>, i32 -> vector<1x128xf32>
    %4 = arith.addf %2, %3 : vector<1x128xf32>
    %c64_i32 = arith.constant 64 : i32
    %5 = tpu.dynamic_rotate %4 by %c64_i32 dim 1 : vector<1x128xf32>, i32 -> vector<1x128xf32>
    %6 = arith.addf %4, %5 : vector<1x128xf32>
    %cst_1 = arith.constant 3.906250e-03 : f32
    %7 = vector.broadcast %cst_1 : f32 to vector<1x128xf32>
    %8 = arith.mulf %6, %7 : vector<1x128xf32>
    %9 = vector.broadcast %8 : vector<1x128xf32> to vector<64x128xf32>
    %10 = arith.subf %0, %9 : vector<64x128xf32>
    %11 = arith.mulf %10, %10 : vector<64x128xf32>
    %cst_2 = arith.constant dense<0.000000e+00> : vector<128xf32>
    %12 = vector.multi_reduction <add>, %11, %cst_2 [0] : vector<64x128xf32> to vector<128xf32>
    %13 = vector.shape_cast %12 : vector<128xf32> to vector<1x128xf32>
    %c32_i32_3 = arith.constant 32 : i32
    %14 = tpu.dynamic_rotate %13 by %c32_i32_3 dim 1 : vector<1x128xf32>, i32 -> vector<1x128xf32>
    %15 = arith.addf %13, %14 : vector<1x128xf32>
    %c64_i32_4 = arith.constant 64 : i32
    %16 = tpu.dynamic_rotate %15 by %c64_i32_4 dim 1 : vector<1x128xf32>, i32 -> vector<1x128xf32>
    %17 = arith.addf %15, %16 : vector<1x128xf32>
    %cst_5 = arith.constant 3.906250e-03 : f32
    %18 = vector.broadcast %cst_5 : f32 to vector<1x128xf32>
    %19 = arith.mulf %17, %18 : vector<1x128xf32>
    %cst_6 = arith.constant 0.000000e+00 : f32
    %20 = vector.broadcast %cst_6 : f32 to vector<1x128xf32>
    %21 = arith.maximumf %19, %20 : vector<1x128xf32>
    %cst_7 = arith.constant 9.99999974E-6 : f32
    %22 = vector.broadcast %cst_7 : f32 to vector<1x128xf32>
    %23 = arith.addf %21, %22 : vector<1x128xf32>
    %24 = math.rsqrt %23 : vector<1x128xf32>
    %c0_8 = arith.constant 0 : index
    %c0_9 = arith.constant 0 : index
    %25 = vector.load %arg1[%c0_8, %c0_9] : memref<1x128xf32, #tpu.memory_space<vmem>>, vector<1x128xf32>
    %26 = arith.mulf %25, %24 : vector<1x128xf32>
    %c0_10 = arith.constant 0 : index
    %c0_11 = arith.constant 0 : index
    %27 = vector.load %arg2[%c0_10, %c0_11] : memref<1x128xf32, #tpu.memory_space<vmem>>, vector<1x128xf32>
    %28 = arith.mulf %8, %26 : vector<1x128xf32>
    %29 = arith.subf %27, %28 : vector<1x128xf32>
    %30 = vector.broadcast %26 : vector<1x128xf32> to vector<64x128xf32>
    %31 = arith.mulf %0, %30 : vector<64x128xf32>
    %32 = vector.broadcast %29 : vector<1x128xf32> to vector<64x128xf32>
    %33 = arith.addf %31, %32 : vector<64x128xf32>
    %c0_12 = arith.constant 0 : index
    %c0_13 = arith.constant 0 : index
    %34 = vector.load %arg3[%c0_12, %c0_13] : memref<64x128xf32, #tpu.memory_space<vmem>>, vector<64x128xf32>
    tpu.vector_store %arg3[%c0_12, %c0_13], %33 {strides = array<i32>} : memref<64x128xf32, #tpu.memory_space<vmem>>, vector<64x128xf32>,
    return
  }
}

</mosaic_0001>

<bundles_post_ra>
// kernel: minkowski_sync_batchnorm_forward.1
= control target key start
LH: loop header
LB: loop body
LE: loop exit
PB: predicated region body
PF: predicated region fallthrough
CT: control target
= control target key end

     0   :  { %s134_s28 = smov 32   ;;  %s135_s29 = smov 64   ;;  %s254_s0 = inlined_call_operand.vmem [shape: f32[64,128], index: 0, kind: input, shape index: {}]   ;;  %s255_s1 = inlined_call_operand.vmem [shape: f32[1,128], index: 1, kind: input, shape index: {}]   ;;  %s256_s2 = inlined_call_operand.vmem [shape: f32[1,128], index: 2, kind: input, shape index: {}]   ;;  %s257_s3 = inlined_call_operand.vmem [shape: f32[64,128], index: 3, kind: output, shape index: {}]  }
   0x1   :  { %v159_v0 = vld [vmem:[%s254_s0] sm:$0xff]  ;;  %v164_v1 = vld [vmem:[%s254_s0 + $0x8] sm:$0xff]  ;;  %v169_v2 = vld [vmem:[%s254_s0 + $0x10] sm:$0xff] }
   0x2   :  { %v22_v3 = vadd.f32 %v164_v1, %v159_v0  ;;  %v176_v4 = vld [vmem:[%s254_s0 + $0x18] sm:$0xff]  ;;  %v182_v6 = vld [vmem:[%s254_s0 + $0x20] sm:$0xff]  ;;  %v188_v8 = vld [vmem:[%s254_s0 + $0x28] sm:$0xff] }
   0x3   :  { %v194_v10 = vld [vmem:[%s254_s0 + $0x30] sm:$0xff]  ;;  %v200_v12 = vld [vmem:[%s254_s0 + $0x38] sm:$0xff] }
   0x4   :  { %v23_v5 = vadd.f32 %v22_v3, %v169_v2 }
   0x6   :  { %v24_v7 = vadd.f32 %v23_v5, %v176_v4 }
   0x8   :  { %v25_v9 = vadd.f32 %v24_v7, %v182_v6 }
   0xa   :  { %v26_v11 = vadd.f32 %v25_v9, %v188_v8 }
   0xc   :  { %v27_v13 = vadd.f32 %v26_v11, %v194_v10  ;;  %v91_v11 = vld [vmem:[%s255_s1] sm:$0x1] }
   0xe   :  { %v28_v14 = vadd.f32 %v27_v13, %v200_v12 }
  0x10   :  { %v29_v15 = vrot.slane %v28_v14, 4 }
  0x12   :  { %v30_v16 = vadd.f32 %v29_v15, %v28_v14 }
  0x14   :  { %v31_v17 = vrot.slane %v30_v16, 2 }
  0x16   :  { %v32_v18 = vadd.f32 %v31_v17, %v30_v16  ;;  %v93_v16 = vld [vmem:[%s256_s2] sm:$0x1] }
  0x18   :  { %v33_v19 = vrot.slane %v32_v18, 1 }
  0x1a   :  { %v34_v20 = vadd.f32 %v33_v19, %v32_v18 }
  0x1c   :  { %35 = vrot.lane.b32.xlu0 %v34_v20, %s134_s28 }
  0x8e   :  { %v36_v21 = vpop.permute.xlu0 %35 }
  0x8f   :  { %v37_v22 = vadd.f32 %v36_v21, %v34_v20 }
  0x91   :  { %38 = vrot.lane.b32.xlu0 %v37_v22, %s135_s29 }
 0x103   :  { %v39_v23 = vpop.permute.xlu0 %38 }
 0x104   :  { %v40_v24 = vadd.f32 %v39_v23, %v37_v22 }
 0x106   :  { %v41_v25 = vmul.f32 0.00390625, %v40_v24 }
 0x108   :  { %v42_v26 = vperm.slane %v41_v25, 0 }
 0x10a   :  { %v43_v27 = vsub.f32 %v159_v0, %v42_v26  ;;  %v44_v28 = vsub.f32 %v164_v1, %v42_v26  ;;  %v45_v29 = vsub.f32 %v169_v2, %v42_v26  ;;  %v46_v30 = vsub.f32 %v176_v4, %v42_v26 }
 0x10b   :  { %v47_v33 = vsub.f32 %v182_v6, %v42_v26  ;;  %v48_v36 = vsub.f32 %v188_v8, %v42_v26  ;;  %v49_v39 = vsub.f32 %v194_v10, %v42_v26  ;;  %v50_v42 = vsub.f32 %v200_v12, %v42_v26 }
 0x10c   :  { %v51_v31 = vmul.f32 %v43_v27, %v43_v27  ;;  %v52_v32 = vmul.f32 %v44_v28, %v44_v28  ;;  %v53_v34 = vmul.f32 %v45_v29, %v45_v29  ;;  %v54_v37 = vmul.f32 %v46_v30, %v46_v30 }
 0x10d   :  { %v55_v40 = vmul.f32 %v47_v33, %v47_v33  ;;  %v56_v43 = vmul.f32 %v48_v36, %v48_v36  ;;  %v57_v45 = vmul.f32 %v49_v39, %v49_v39  ;;  %v58_v47 = vmul.f32 %v50_v42, %v50_v42 }
 0x10e   :  { %v59_v35 = vadd.f32 %v52_v32, %v51_v31 }
 0x110   :  { %v60_v38 = vadd.f32 %v59_v35, %v53_v34 }
 0x112   :  { %v61_v41 = vadd.f32 %v60_v38, %v54_v37 }
 0x114   :  { %v62_v44 = vadd.f32 %v61_v41, %v55_v40 }
 0x116   :  { %v63_v46 = vadd.f32 %v62_v44, %v56_v43 }
 0x118   :  { %v64_v48 = vadd.f32 %v63_v46, %v57_v45 }
 0x11a   :  { %v65_v49 = vadd.f32 %v64_v48, %v58_v47 }
 0x11c   :  { %v66_v50 = vrot.slane %v65_v49, 4 }
 0x11e   :  { %v67_v51 = vadd.f32 %v66_v50, %v65_v49 }
 0x120   :  { %v68_v52 = vrot.slane %v67_v51, 2 }
 0x122   :  { %v69_v53 = vadd.f32 %v68_v52, %v67_v51 }
 0x124   :  { %v70_v54 = vrot.slane %v69_v53, 1 }
 0x126   :  { %v71_v55 = vadd.f32 %v70_v54, %v69_v53 }
 0x128   :  { %72 = vrot.lane.b32.xlu1 %v71_v55, %s134_s28 }
 0x19a   :  { %v73_v56 = vpop.permute.xlu1 %72 }
 0x19b   :  { %v74_v57 = vadd.f32 %v73_v56, %v71_v55 }
 0x19d   :  { %75 = vrot.lane.b32.xlu1 %v74_v57, %s135_s29 }
 0x20f   :  { %v76_v58 = vpop.permute.xlu1 %75 }
 0x210   :  { %v77_v59 = vadd.f32 %v76_v58, %v74_v57 }
 0x212   :  { %v78_v60 = vmul.f32 0.00390625, %v77_v59 }
 0x214   :  { %v79_v61 = vmax.f32 %v78_v60, 0.0 }
 0x216   :  { %v80_v62 = vadd.f32 1e-05, %v79_v61 }
 0x218   :  { %132 = vrsqrt.f32 %v80_v62  ;;  %vm87_vm1 = vweird.f32 %v80_v62 }
 0x21e   :  { %v133_v63 = vpop.eup %132 }
 0x21f   :  { %v82_v3 = vmul.f32 %v133_v63, %v80_v62  ;;  %vm88_vm0 = vweird.f32 %v133_v63 }
 0x220   :  { %vm89_vm2 = vmor %vm87_vm1, %vm88_vm0 }
 0x221   :  { %v83_v5 = vmul.f32 %v133_v63, %v82_v3 }
 0x223   :  { %v84_v7 = vmul.f32 0.5, %v83_v5 }
 0x225   :  { %v85_v9 = vsub.f32 1.5, %v84_v7 }
 0x227   :  { %v86_v13 = vmul.f32 %v133_v63, %v85_v9 }
 0x229   :  { %v90_v14 = vsel %vm89_vm2, %v133_v63, %v86_v13 }
 0x22a   :  { %v92_v15 = vmul.f32 %v91_v11, %v90_v14 }
 0x22c   :  { %v94_v17 = vmul.f32 %v92_v15, %v41_v25  ;;  %v97_v18 = vperm.slane %v92_v15, 0 }
 0x22e   :  { %v95_v19 = vsub.f32 %v93_v16, %v94_v17  ;;  %v99_v20 = vmul.f32 %v97_v18, %v159_v0  ;;  %v100_v21 = vmul.f32 %v97_v18, %v164_v1  ;;  %v101_v22 = vmul.f32 %v97_v18, %v169_v2 }
 0x22f   :  { %v102_v24 = vmul.f32 %v97_v18, %v176_v4  ;;  %v103_v26 = vmul.f32 %v97_v18, %v182_v6  ;;  %v104_v30 = vmul.f32 %v97_v18, %v188_v8  ;;  %v105_v25 = vmul.f32 %v97_v18, %v194_v10 }
 0x230   :  { %v108_v23 = vperm.slane %v95_v19, 0  ;;  %v106_v0 = vmul.f32 %v97_v18, %v200_v12 }
 0x232   :  { %v110_v27 = vadd.f32 %v108_v23, %v99_v20  ;;  %v111_v28 = vadd.f32 %v108_v23, %v100_v21  ;;  %v112_v29 = vadd.f32 %v108_v23, %v101_v22  ;;  %v113_v31 = vadd.f32 %v108_v23, %v102_v24 }
 0x233   :  { %v114_v32 = vadd.f32 %v108_v23, %v103_v26  ;;  %v115_v1 = vadd.f32 %v108_v23, %v104_v30  ;;  %v116_v2 = vadd.f32 %v108_v23, %v105_v25  ;;  %v117_v4 = vadd.f32 %v108_v23, %v106_v0 }
 0x234   :  { %118 = vst [vmem:[%s257_s3] sm:$0xff] %v110_v27 }
 0x235   :  { %119 = vst [vmem:[%s257_s3 + $0x8] sm:$0xff] %v111_v28 }
 0x236   :  { %120 = vst [vmem:[%s257_s3 + $0x10] sm:$0xff] %v112_v29 }
 0x237   :  { %121 = vst [vmem:[%s257_s3 + $0x18] sm:$0xff] %v113_v31 }
 0x238   :  { %122 = vst [vmem:[%s257_s3 + $0x20] sm:$0xff] %v114_v32 }
 0x239   :  { %123 = vst [vmem:[%s257_s3 + $0x28] sm:$0xff] %v115_v1 }
 0x23a   :  { %124 = vst [vmem:[%s257_s3 + $0x30] sm:$0xff] %v116_v2 }
 0x23b   :  { %125 = vst [vmem:[%s257_s3 + $0x38] sm:$0xff] %v117_v4 }

</bundles_post_ra>
